<compile_context>
chip_gen: v7x
topology: tpu7x:2x2x1
jax: 0.10.0
libtpu: 0.0.40
codegen_flags: <defaults>
</compile_context>

<pallas_src>
import functools

import jax
import jax.numpy as jnp
from jax import lax
from jax.experimental import pallas as pl
from jax.experimental.pallas import tpu as pltpu


# ----------------------------------------------------------------------------
# Kernels
# ----------------------------------------------------------------------------

def _bn_fused_kernel(x_ref, w_ref, b_ref, y_ref, mean_ref, var_ref,
                     *, eps: float, m_count: int):
    """Single-pass path: one channel tile, full batch+spatial extent resident.

    x_ref: (N, tc, HW) in the activation dtype; w/b refs: (1, tc, 1) f32.
    All statistics math is f32 regardless of input dtype (v5e has no bf16 VPU).
    """
    x = x_ref[...].astype(jnp.float32)                    # (N, tc, HW)
    m = jnp.float32(m_count)                              # exact up to 2^24

    # Fused (batch, spatial) reduction -> no (tc, HW) f32 temporaries in VMEM.
    s = jnp.sum(x, axis=(0, 2), keepdims=True)            # (1, tc, 1)
    ss = jnp.sum(x * x, axis=(0, 2), keepdims=True)       # (1, tc, 1)

    mean = s / m
    # One-pass E[x^2]-E[x]^2 can go slightly negative from cancellation; the
    # clamp also keeps rsqrt finite on padded (garbage) channel rows of a
    # ragged last tile (their stores are masked away anyway).
    var = jnp.maximum(ss / m - mean * mean, 0.0)          # biased batch var

    inv_std = lax.rsqrt(var + jnp.float32(eps))           # EUP rsqrt (free slot)
    scale = inv_std * w_ref[...]                          # (1, tc, 1)
    shift = b_ref[...] - mean * scale                     # (1, tc, 1)
    y_ref[...] = (x * scale + shift).astype(y_ref.dtype)  # 2 VPU ops / element

    mean_ref[...] = mean
    var_ref[...] = var


def _bn_stats_kernel(x_ref, sum_ref, sq_ref):
    """Two-phase path, phase 1: accumulate per-channel sum / sum-of-squares.

    grid = (C_tiles, N_tiles); the batch axis is 'arbitrary', so the
    (1, tc, 1) output blocks stay resident and act as f32 accumulators.
    """
    @pl.when(pl.program_id(1) == 0)
    def _():
        sum_ref[...] = jnp.zeros_like(sum_ref)
        sq_ref[...] = jnp.zeros_like(sq_ref)

    x = x_ref[...].astype(jnp.float32)                    # (tn, tc, HW)
    sum_ref[...] += jnp.sum(x, axis=(0, 2), keepdims=True)
    sq_ref[...] += jnp.sum(x * x, axis=(0, 2), keepdims=True)


def _bn_apply_kernel(x_ref, scale_ref, shift_ref, y_ref):
    """Two-phase path, phase 2: y = x * scale + shift (per channel)."""
    x = x_ref[...].astype(jnp.float32)
    y_ref[...] = (x * scale_ref[...] + shift_ref[...]).astype(y_ref.dtype)


# ----------------------------------------------------------------------------
# Budget / tiling selection
# ----------------------------------------------------------------------------

def _vmem_budgets(block_budget_bytes=None, vmem_limit_bytes=None):
    """Generation-keyed VMEM budgets (v7x: 64 MiB VMEM; v5e/v6e: 128 MiB)."""
    try:
        phys = int(pltpu.get_tpu_info().vmem_capacity_bytes)
    except Exception:
        phys = 64 * 1024 * 1024          # conservative: v7x per-TC VMEM
    if vmem_limit_bytes is None:
        # Leave ~25% headroom for params / stats / compiler scratch.
        vmem_limit_bytes = min((phys * 3) // 4, 100 * 1024 * 1024)
    if block_budget_bytes is None:
        # Working set ~= 4x block (double-buffered x-in + y-out) + tiny params.
        #   v7x  (64 MiB VMEM) -> limit 48 MiB ->  8 MiB blocks
        #   v5e/v6e (128 MiB)  -> limit 96 MiB -> 16 MiB blocks
        block_budget_bytes = max(2 * 1024 * 1024,
                                 min(vmem_limit_bytes // 6, 16 * 1024 * 1024))
    return int(block_budget_bytes), int(vmem_limit_bytes)


def _round_down_to(v, g):
    return (v // g) * g


def _prefer_divisor(c, cap, g):
    """Largest multiple of g that is <= cap and divides c; else cap."""
    t = cap
    while t >= g:
        if c % t == 0:
            return t
        t -= g
    return cap


def _select_tiles(n, c, hw, itemsize, budget):
    """Returns (tc, tn); tn is None for the single-pass (full-batch) path."""
    g = max(8, 32 // itemsize)           # sublane granule: f32 8, bf16 16, i8 32
    whole = n * c * hw * itemsize
    if whole <= budget:
        # Everything fits in one block.  Still split the channel axis in two
        # (granule-aligned) when possible so dimension_semantics=('parallel',)
        # has >= 2 grid steps to shard across v7x's two TensorCores.
        if c >= 2 * g:
            cap = max(g, _round_down_to(c // 2, g))
            tc = _prefer_divisor(c, cap, g)
        else:
            tc = c
    else:
        per_chan_row = n * hw * itemsize
        cap = max(g, _round_down_to(budget // max(per_chan_row, 1), g))
        cap = min(cap, c)
        tc = _prefer_divisor(c, cap, g) if cap < c else c

    if n * tc * hw * itemsize <= budget:
        return tc, None

    # Even the minimum channel tile over the full batch exceeds the budget
    # (large N*HW): fall back to the two-phase kernel and split the batch too.
    tc = min(g, c)
    per_batch_row = tc * hw * itemsize
    tn = max(1, budget // max(per_batch_row, 1))
    tn = min(tn, n)
    # Keep tn a divisor of N so padded (garbage) batch rows never reach the
    # sum/sumsq accumulators.
    while tn > 1 and n % tn != 0:
        tn -= 1
    return tc, tn


# ----------------------------------------------------------------------------
# Wrapper
# ----------------------------------------------------------------------------

def meta_batch_norm2d(x_nchw, weight, bias, running_mean, running_var,
                      *, eps=1e-5, momentum=0.1,
                      block_budget_bytes=None, vmem_limit_bytes=None):
    """Training-mode BatchNorm2d.  x_nchw: (N, C, H, W), native dtype kept.

    Returns (y, new_running_mean, new_running_var).
    """
    n, c, h, w = x_nchw.shape
    hw = h * w
    m_count = n * hw
    dtype = x_nchw.dtype
    itemsize = jnp.dtype(dtype).itemsize

    budget, vmem_limit = _vmem_budgets(block_budget_bytes, vmem_limit_bytes)
    tc, tn = _select_tiles(n, c, hw, itemsize, budget)

    # Free reshapes only (no HBM transpose): NCHW -> (N, C, H*W).
    # TODO(synk): for small-HW layers far from a multiple of 128 (e.g. 7x7
    # ResNet tails), pad HW or use a channels-on-lanes variant for lane-dense
    # stores; not needed for the shapes exercised here.
    x3d = x_nchw.reshape(n, c, hw)
    w3d = weight.reshape(1, c, 1).astype(jnp.float32)
    b3d = bias.reshape(1, c, 1).astype(jnp.float32)

    c_tiles = pl.cdiv(c, tc)
    p_blk = (1, tc, 1)

    if tn is None:
        # ---- single-pass fused path: full batch+spatial per channel tile ---
        kernel = functools.partial(_bn_fused_kernel, eps=float(eps),
                                   m_count=m_count)
        x_spec = pl.BlockSpec((n, tc, hw), lambda i: (0, i, 0))
        p_spec = pl.BlockSpec(p_blk, lambda i: (0, i, 0))

        y3d, mean3d, var3d = pl.pallas_call(
            kernel,
            out_shape=(
                jax.ShapeDtypeStruct((n, c, hw), dtype),
                jax.ShapeDtypeStruct((1, c, 1), jnp.float32),
                jax.ShapeDtypeStruct((1, c, 1), jnp.float32),
            ),
            grid=(c_tiles,),
            in_specs=[x_spec, p_spec, p_spec],
            out_specs=(x_spec, p_spec, p_spec),
            compiler_params=pltpu.CompilerParams(
                dimension_semantics=("parallel",),
                vmem_limit_bytes=vmem_limit),
        )(x3d, w3d, b3d)
        mean3d_f, var3d_f = mean3d, var3d
    else:
        # ---- two-phase path (large N*HW): stats pass, then apply pass ------
        n_tiles = pl.cdiv(n, tn)
        x_spec = pl.BlockSpec((tn, tc, hw), lambda i, j: (j, i, 0))
        p_spec = pl.BlockSpec(p_blk, lambda i, j: (0, i, 0))

        s3d, ss3d = pl.pallas_call(
            _bn_stats_kernel,
            out_shape=(
                jax.ShapeDtypeStruct((1, c, 1), jnp.float32),
                jax.ShapeDtypeStruct((1, c, 1), jnp.float32),
            ),
            grid=(c_tiles, n_tiles),
            in_specs=[x_spec],
            out_specs=(p_spec, p_spec),
            compiler_params=pltpu.CompilerParams(
                dimension_semantics=("parallel", "arbitrary"),
                vmem_limit_bytes=vmem_limit),
        )(x3d)

        m = jnp.float32(m_count)
        mean3d_f = s3d / m
        var3d_f = jnp.maximum(ss3d / m - mean3d_f * mean3d_f, 0.0)
        scale = w3d * lax.rsqrt(var3d_f + jnp.float32(eps))
        shift = b3d - mean3d_f * scale

        y3d = pl.pallas_call(
            _bn_apply_kernel,
            out_shape=jax.ShapeDtypeStruct((n, c, hw), dtype),
            grid=(c_tiles, n_tiles),
            in_specs=[x_spec, p_spec, p_spec],
            out_specs=x_spec,
            compiler_params=pltpu.CompilerParams(
                dimension_semantics=("parallel", "parallel"),
                vmem_limit_bytes=vmem_limit),
        )(x3d, scale, shift)

    # Running-stat EMA on (C,) vectors in plain JAX (removes tiny per-step
    # DMAs from the kernel; PyTorch uses the *unbiased* batch variance here).
    mean_c = mean3d_f.reshape(c)
    var_c = var3d_f.reshape(c)
    unbiased_var = var_c * (m_count / max(m_count - 1, 1))
    mom = jnp.float32(momentum)
    new_rm = (1.0 - mom) * running_mean.astype(jnp.float32) + mom * mean_c
    new_rv = (1.0 - mom) * running_var.astype(jnp.float32) + mom * unbiased_var

    return y3d.reshape(n, c, h, w), new_rm, new_rv


# ----------------------------------------------------------------------------
# Reference + test
# ----------------------------------------------------------------------------

def _reference(x, weight, bias, running_mean, running_var, eps, momentum):
    """Pure-JAX f32 reference matching F.batch_norm(training=True)."""
    m = x.shape[0] * x.shape[2] * x.shape[3]
    mean = jnp.mean(x, axis=(0, 2, 3))
    var = jnp.mean((x - mean.reshape(1, -1, 1, 1)) ** 2, axis=(0, 2, 3))
    y = ((x - mean.reshape(1, -1, 1, 1))
         / jnp.sqrt(var.reshape(1, -1, 1, 1) + eps)
         * weight.reshape(1, -1, 1, 1) + bias.reshape(1, -1, 1, 1))
    unbiased_var = var * (m / max(m - 1, 1))
    new_rm = (1.0 - momentum) * running_mean + momentum * mean
    new_rv = (1.0 - momentum) * running_var + momentum * unbiased_var
    return y, new_rm, new_rv


def _run_case(key, shape, dtype, label, atol, rtol, **overrides):
    n, c, h, w = shape
    kx, krm, krv = jax.random.split(key, 3)
    x = jax.random.normal(kx, shape, dtype=jnp.float32).astype(dtype)
    weight = jnp.linspace(0.5, 1.5, c, dtype=jnp.float32)
    bias = jnp.linspace(-0.3, 0.3, c, dtype=jnp.float32)
    running_mean = 0.1 * jax.random.normal(krm, (c,), dtype=jnp.float32)
    running_var = 1.0 + 0.1 * jax.random.uniform(krv, (c,), dtype=jnp.float32)
    eps, momentum = 1e-5, 0.1

    y, new_rm, new_rv = meta_batch_norm2d(
        x, weight, bias, running_mean, running_var,
        eps=eps, momentum=momentum, **overrides)
    jax.block_until_ready((y, new_rm, new_rv))

    y_ref, rm_ref, rv_ref = _reference(
        x.astype(jnp.float32), weight, bias, running_mean, running_var,
        eps, momentum)

    assert y.dtype == dtype, f"{label}: y dtype {y.dtype} != {dtype}"
    assert jnp.allclose(y.astype(jnp.float32), y_ref, atol=atol, rtol=rtol), \
        f"{label}: y mismatch vs reference"
    assert jnp.allclose(new_rm, rm_ref, atol=1e-4, rtol=1e-4), \
        f"{label}: running_mean mismatch"
    assert jnp.allclose(new_rv, rv_ref, atol=1e-4, rtol=1e-4), \
        f"{label}: running_var mismatch"


if __name__ == "__main__":
    key = jax.random.PRNGKey(0)
    k1, k2, k3, k4 = jax.random.split(key, 4)

    # 1) Default path (single-pass fused kernel), f32.
    _run_case(k1, (2, 4, 16, 16), jnp.float32, "fused_f32",
              atol=1e-4, rtol=1e-4)

    # 2) Forced channel tiling (grid over C, single-pass per tile).
    _run_case(k2, (2, 16, 8, 8), jnp.float32, "channel_tiled_f32",
              atol=1e-4, rtol=1e-4, block_budget_bytes=4096)

    # 3) Forced two-phase path (stats accumulation over batch tiles + apply).
    _run_case(k3, (2, 4, 16, 16), jnp.float32, "two_phase_f32",
              atol=1e-4, rtol=1e-4, block_budget_bytes=4096)

    # 4) Native bf16 I/O (f32 math inside the kernel).
    _run_case(k4, (2, 4, 16, 16), jnp.bfloat16, "fused_bf16",
              atol=3e-2, rtol=3e-2)

    print("KERNEL_OK")
</pallas_src>

<mosaic_0001>
module attributes {stable_mosaic.version = 11 : i64} {
  func.func @_bn_fused_kernel(%arg0: i32, %arg1: memref<2x4x256xf32, #tpu.memory_space<vmem>>, %arg2: memref<1x4x1xf32, #tpu.memory_space<vmem>>, %arg3: memref<1x4x1xf32, #tpu.memory_space<vmem>>, %arg4: memref<2x4x256xf32, #tpu.memory_space<vmem>>, %arg5: memref<1x4x1xf32, #tpu.memory_space<vmem>>, %arg6: memref<1x4x1xf32, #tpu.memory_space<vmem>>) attributes {dimension_semantics = [#tpu.dimension_semantics<parallel>], iteration_bounds = array<i64: 1>, scalar_prefetch = 0 : i64, scratch_operands = 0 : i64, tpu.core_type = #tpu.core_type<tc>, window_params = [{transform_indices = @transform_0, window_bounds = array<i64: 2, 4, 256>}, {transform_indices = @transform_1, window_bounds = array<i64: 1, 4, 1>}, {transform_indices = @transform_2, window_bounds = array<i64: 1, 4, 1>}, {transform_indices = @transform_3, window_bounds = array<i64: 2, 4, 256>}, {transform_indices = @transform_4, window_bounds = array<i64: 1, 4, 1>}, {transform_indices = @transform_5, window_bounds = array<i64: 1, 4, 1>}]} {
    %c0 = arith.constant 0 : index
    %c0_0 = arith.constant 0 : index
    %c0_1 = arith.constant 0 : index
    %0 = vector.load %arg1[%c0, %c0_0, %c0_1] : memref<2x4x256xf32, #tpu.memory_space<vmem>>, vector<2x4x256xf32>
    %cst = arith.constant dense<0.000000e+00> : vector<4xf32>
    %1 = vector.multi_reduction <add>, %0, %cst [0, 2] : vector<2x4x256xf32> to vector<4xf32>
    %2 = vector.shape_cast %1 : vector<4xf32> to vector<1x4x1xf32>
    %3 = arith.mulf %0, %0 : vector<2x4x256xf32>
    %cst_2 = arith.constant dense<0.000000e+00> : vector<4xf32>
    %4 = vector.multi_reduction <add>, %3, %cst_2 [0, 2] : vector<2x4x256xf32> to vector<4xf32>
    %5 = vector.shape_cast %4 : vector<4xf32> to vector<1x4x1xf32>
    %cst_3 = arith.constant 5.120000e+02 : f32
    %6 = vector.broadcast %cst_3 : f32 to vector<1x4x1xf32>
    %7 = arith.divf %2, %6 : vector<1x4x1xf32>
    %cst_4 = arith.constant 5.120000e+02 : f32
    %8 = vector.broadcast %cst_4 : f32 to vector<1x4x1xf32>
    %9 = arith.divf %5, %8 : vector<1x4x1xf32>
    %10 = arith.mulf %7, %7 : vector<1x4x1xf32>
    %11 = arith.subf %9, %10 : vector<1x4x1xf32>
    %cst_5 = arith.constant 0.000000e+00 : f32
    %12 = vector.broadcast %cst_5 : f32 to vector<1x4x1xf32>
    %13 = arith.maximumf %11, %12 : vector<1x4x1xf32>
    %cst_6 = arith.constant 9.99999974E-6 : f32
    %14 = vector.broadcast %cst_6 : f32 to vector<1x4x1xf32>
    %15 = arith.addf %13, %14 : vector<1x4x1xf32>
    %16 = math.rsqrt %15 : vector<1x4x1xf32>
    %c0_7 = arith.constant 0 : index
    %c0_8 = arith.constant 0 : index
    %c0_9 = arith.constant 0 : index
    %17 = vector.load %arg2[%c0_7, %c0_8, %c0_9] : memref<1x4x1xf32, #tpu.memory_space<vmem>>, vector<1x4x1xf32>
    %18 = arith.mulf %16, %17 : vector<1x4x1xf32>
    %c0_10 = arith.constant 0 : index
    %c0_11 = arith.constant 0 : index
    %c0_12 = arith.constant 0 : index
    %19 = vector.load %arg3[%c0_10, %c0_11, %c0_12] : memref<1x4x1xf32, #tpu.memory_space<vmem>>, vector<1x4x1xf32>
    %20 = arith.mulf %7, %18 : vector<1x4x1xf32>
    %21 = arith.subf %19, %20 : vector<1x4x1xf32>
    %22 = vector.broadcast %18 : vector<1x4x1xf32> to vector<2x4x256xf32>
    %23 = arith.mulf %0, %22 : vector<2x4x256xf32>
    %24 = vector.broadcast %21 : vector<1x4x1xf32> to vector<2x4x256xf32>
    %25 = arith.addf %23, %24 : vector<2x4x256xf32>
    %c0_13 = arith.constant 0 : index
    %c0_14 = arith.constant 0 : index
    %c0_15 = arith.constant 0 : index
    %26 = vector.load %arg4[%c0_13, %c0_14, %c0_15] : memref<2x4x256xf32, #tpu.memory_space<vmem>>, vector<2x4x256xf32>
    tpu.vector_store %arg4[%c0_13, %c0_14, %c0_15], %25 {strides = array<i32>} : memref<2x4x256xf32, #tpu.memory_space<vmem>>, vector<2x4x256xf32>,
    %c0_16 = arith.constant 0 : index
    %c0_17 = arith.constant 0 : index
    %c0_18 = arith.constant 0 : index
    %27 = vector.load %arg5[%c0_16, %c0_17, %c0_18] : memref<1x4x1xf32, #tpu.memory_space<vmem>>, vector<1x4x1xf32>
    tpu.vector_store %arg5[%c0_16, %c0_17, %c0_18], %7 {strides = array<i32>} : memref<1x4x1xf32, #tpu.memory_space<vmem>>, vector<1x4x1xf32>,
    %c0_19 = arith.constant 0 : index
    %c0_20 = arith.constant 0 : index
    %c0_21 = arith.constant 0 : index
    %28 = vector.load %arg6[%c0_19, %c0_20, %c0_21] : memref<1x4x1xf32, #tpu.memory_space<vmem>>, vector<1x4x1xf32>
    tpu.vector_store %arg6[%c0_19, %c0_20, %c0_21], %13 {strides = array<i32>} : memref<1x4x1xf32, #tpu.memory_space<vmem>>, vector<1x4x1xf32>,
    return
  }
  func.func @transform_0(%arg0: i32) -> (i32, i32, i32) {
    %c0_i32 = arith.constant 0 : i32
    %c0_i32_0 = arith.constant 0 : i32
    %c0_i32_1 = arith.constant 0 : i32
    return %c0_i32, %arg0, %c0_i32_0 : i32, i32, i32
  }
  func.func @transform_1(%arg0: i32) -> (i32, i32, i32) {
    %c0_i32 = arith.constant 0 : i32
    %c0_i32_0 = arith.constant 0 : i32
    %c0_i32_1 = arith.constant 0 : i32
    return %c0_i32, %arg0, %c0_i32_0 : i32, i32, i32
  }
  func.func @transform_2(%arg0: i32) -> (i32, i32, i32) {
    %c0_i32 = arith.constant 0 : i32
    %c0_i32_0 = arith.constant 0 : i32
    %c0_i32_1 = arith.constant 0 : i32
    return %c0_i32, %arg0, %c0_i32_0 : i32, i32, i32
  }
  func.func @transform_3(%arg0: i32) -> (i32, i32, i32) {
    %c0_i32 = arith.constant 0 : i32
    %c0_i32_0 = arith.constant 0 : i32
    %c0_i32_1 = arith.constant 0 : i32
    return %c0_i32, %arg0, %c0_i32_0 : i32, i32, i32
  }
  func.func @transform_4(%arg0: i32) -> (i32, i32, i32) {
    %c0_i32 = arith.constant 0 : i32
    %c0_i32_0 = arith.constant 0 : i32
    %c0_i32_1 = arith.constant 0 : i32
    return %c0_i32, %arg0, %c0_i32_0 : i32, i32, i32
  }
  func.func @transform_5(%arg0: i32) -> (i32, i32, i32) {
    %c0_i32 = arith.constant 0 : i32
    %c0_i32_0 = arith.constant 0 : i32
    %c0_i32_1 = arith.constant 0 : i32
    return %c0_i32, %arg0, %c0_i32_0 : i32, i32, i32
  }
}

</mosaic_0001>

<bundles_post_ra>
// kernel: tpu_custom_call.1
= control target key start
LH: loop header
LB: loop body
LE: loop exit
PB: predicated region body
PF: predicated region fallthrough
CT: control target
= control target key end

     0   :  { %11 = vsyncpa [#allocation3], 0  ;;  %s284_s0 = inlined_call_operand.hbm [shape: f32[2,4,256], index: 0, kind: input, shape index: {}]   ;;  %s285_s1 = inlined_call_operand.vmem [shape: f32[1,4,1], index: 1, kind: input, shape index: {}]   ;;  %s286_s2 = inlined_call_operand.vmem [shape: f32[1,4,1], index: 2, kind: input, shape index: {}]   ;;  %s287_s3 = inlined_call_operand.hbm [shape: f32[2,4,256], index: 3, kind: output, shape index: {0}]   ;;  %s288_s4 = inlined_call_operand.vmem [shape: f32[1,4,1], index: 4, kind: output, shape index: {1}]   ;;  %s289_s5 = inlined_call_operand.vmem [shape: f32[1,4,1], index: 5, kind: output, shape index: {2}]  }
   0x1   :  { %12 = vsyncpa [#allocation4], 0  ;;  %s198_s18 = smov [#allocation2]   ;;  %s150_s22 = scalar_lea.hbm %s284_s0, 256 }
   0x2   :  { %s18_s19 = sshll.u32 %s198_s18, 4  ;;  %p151_p0 = scmp.ne.s32.totalorder %s284_s0, %s150_s22  ;;  %s19_s19 = int_to_ptr.vmem [resolvable:$true] %s18_s19 }
   0x3   :  { %p154_p1 = scmp.lt.u32.totalorder %s150_s22, %s284_s0 }
   0x5   :  { %p156_p2 = pnand %p154_p1, %p151_p0 }
   0x7   :  { %159 = shalt.err (!%p156_p2)
}
   0x8   :  { %s160_s27 = scalar_lea.vmem %s19_s19, 256  ;;  %p165_p4 = scmp.lt.s32.totalorder %s19_s19, %s19_s19 }
   0x9   :  { %p161_p3 = scmp.ne.s32.totalorder %s19_s19, %s160_s27  ;;  %p166_p5 = scmp.lt.s32.totalorder %s160_s27, %s160_s27 }
   0xb   :  { %p167_p6 = por %p166_p5, %p165_p4 }
   0xd   :  { %p168_p7 = pnand %p167_p6, %p161_p3 }
   0xf   :  { %171 = shalt.err (!%p168_p7)
}
  0x10   :  { %s199_s28 = smov 128   ;;  %s200_s29 = smov 8  }
  0x11   :  { %24 = dma.hbm_to_vmem [thread:$0]  %s284_s0, 256, %s19_s19, [#allocation3], %s199_s28, %s199_s28, %s200_s29  }
  0x12   :  { %194 = dma.done.wait [#allocation3], 256  }
  0x13   :  { %195 = vsyncadd [#allocation3], 4294967040  ;;  %vm40_vm0 = vcmask 1043456   ;;  %v32_v0 = vld [vmem:[#allocation2] sm:$0xff]  ;;  %v33_v1 = vld [vmem:[#allocation2 + $0x8] sm:$0xff]  ;;  %v201_v22 = vmov 0   ;;  %v87_v39 = vlaneseq }
  0x14   :  { %v36_v2 = vcombine.high %v32_v0, %v32_v0  ;;  %v37_v3 = vcombine.high %v33_v1, %v33_v1  ;;  %v41_v4 = vsel %vm40_vm0, %v32_v0, 0.0  ;;  %v50_v5 = vmul.f32 %v32_v0, %v32_v0  ;;  %144 = vset.pattern.permute.xlu1 %v201_v22  ;;  %145 = vset.pattern.permute.xlu0 %v201_v22  ;;  %v75_v31 = vld [vmem:[%s285_s1] sm:$0xf]  ;;  %s203_s1 = smov [#allocation5]  }
  0x15   :  { %v51_v6 = vmul.f32 %v33_v1, %v33_v1  ;;  %v44_v8 = vsel %vm40_vm0, %v33_v1, 0.0  ;;  %vm110_vm1 = vcmask 3072   ;;  %v77_v34 = vld [vmem:[%s286_s2] sm:$0xf]  ;;  %v202_v37 = vmov 839922192  }
  0x16   :  { %v42_v7 = vsel %vm40_vm0, %v36_v2, 0.0  ;;  %v54_v10 = vcombine.high %v50_v5, %v50_v5  ;;  %v58_v12 = vsel %vm40_vm0, %v50_v5, 0.0  ;;  %v46_v13 = vsel %vm40_vm0, %v37_v3, 0.0 }
  0x17   :  { %v43_v9 = vadd.f32 %v42_v7, %v41_v4  ;;  %v55_v11 = vcombine.high %v51_v6, %v51_v6  ;;  %v61_v16 = vsel %vm40_vm0, %v51_v6, 0.0  ;;  %v85_v38 = vunpack.c.l.s4 %v202_v37 }
  0x18   :  { %v59_v15 = vsel %vm40_vm0, %v54_v10, 0.0  ;;  %v88_v41 = vshrl.u32 %v87_v39, 7 }
  0x19   :  { %v45_v14 = vadd.f32 %v44_v8, %v43_v9  ;;  %v60_v17 = vadd.f32 %v59_v15, %v58_v12  ;;  %v63_v19 = vsel %vm40_vm0, %v55_v11, 0.0  ;;  %v86_v40 = vunpack.c.0.s8 %v85_v38 }
  0x1b   :  { %v47_v18 = vadd.f32 %v46_v13, %v45_v14  ;;  %v62_v20 = vadd.f32 %v61_v16, %v60_v17  ;;  %v89_v42 = vsub.s32 %v86_v40, %v88_v41 }
  0x1d   :  { %48 = vadd.xlane.f32.xlu0 %v47_v18  ;;  %v64_v21 = vadd.f32 %v63_v19, %v62_v20 }
  0x21   :  { %65 = vadd.xlane.f32.xlu0 %v64_v21 }
  0xaa   :  { %v49_v23 = vpop.xlane.xlu0 %48 }
  0xab   :  { %v68_v24 = vmul.f32 0.001953125, %v49_v23 }
  0xad   :  { %111 = vst.msk [vmem:[%s288_s4] sm:$0xf] %vm110_vm1, %v68_v24  ;;  %v70_v26 = vmul.f32 %v68_v24, %v68_v24  ;;  %s118_s4 = sshll.u32 %s203_s1, 4  ;;  %s119_s4 = int_to_ptr.vmem [resolvable:$true] %s118_s4 }
  0xae   :  { %v66_v25 = vpop.xlane.xlu0 %65  ;;  %s172_s2 = scalar_lea.vmem %s119_s4, 256  ;;  %p177_p9 = scmp.lt.s32.totalorder %s119_s4, %s119_s4 }
  0xaf   :  { %v69_v27 = vmul.f32 0.001953125, %v66_v25  ;;  %p173_p8 = scmp.ne.s32.totalorder %s119_s4, %s172_s2  ;;  %p178_p10 = scmp.lt.s32.totalorder %s172_s2, %s172_s2 }
  0xb1   :  { %v71_v28 = vsub.f32 %v69_v27, %v70_v26  ;;  %p179_p11 = por %p178_p10, %p177_p9 }
  0xb3   :  { %v72_v29 = vmax.f32 %v71_v28, 0.0  ;;  %p180_p12 = pnand %p179_p11, %p173_p8 }
  0xb5   :  { %v73_v30 = vadd.f32 1e-05, %v72_v29  ;;  %112 = vst.msk [vmem:[%s289_s5] sm:$0xf] %vm110_vm1, %v72_v29 }
  0xb7   :  { %148 = vrsqrt.f32 %v73_v30 }
  0xc1   :  { %v149_v32 = vpop.eup %148 }
  0xc2   :  { %v76_v33 = vmul.f32 %v149_v32, %v75_v31 }
  0xc4   :  { %82 = vperm.xlu1 %144, %v76_v33   ;;  %v78_v35 = vmul.f32 %v76_v33, %v68_v24 }
  0xc6   :  { %v79_v36 = vsub.f32 %v77_v34, %v78_v35 }
  0xc8   :  { %96 = vperm.xlu1 %144, %v79_v36  }
 0x143   :  { %v83_v43 = vpop.permute.xlu1 %82 }
 0x144   :  { %v90_v44 = vrot.slane %v83_v43, %v89_v42 }
 0x146   :  { %v92_v46 = vmul.f32 %v90_v44, %v32_v0  ;;  %v93_v47 = vmul.f32 %v90_v44, %v33_v1 }
 0x147   :  { %v97_v45 = vpop.permute.xlu1 %96 }
 0x148   :  { %v104_v48 = vrot.slane %v97_v45, %v89_v42 }
 0x14a   :  { %v106_v49 = vadd.f32 %v104_v48, %v92_v46  ;;  %v107_v50 = vadd.f32 %v104_v48, %v93_v47 }
 0x14c   :  { %108 = vst [vmem:[#allocation5] sm:$0xff] %v106_v49  ;;  %109 = vst [vmem:[#allocation5 + $0x8] sm:$0xff] %v107_v50 }
 0x14d   :  { %183 = shalt.err (!%p180_p12)
}
 0x14e   :  { %s184_s15 = scalar_lea.hbm %s287_s3, 256 }
 0x14f   :  { %p185_p13 = scmp.ne.s32.totalorder %s287_s3, %s184_s15  ;;  %p188_p0 = scmp.lt.u32.totalorder %s184_s15, %s287_s3 }
 0x151   :  { %p190_p1 = pnand %p188_p0, %p185_p13 }
 0x153   :  { %193 = shalt.err (!%p190_p1)
}
 0x154   :  { %124 = dma.vmem_to_hbm [thread:$0]  %s119_s4, 256, %s287_s3, [#allocation4], %s199_s28, %s199_s28, %s200_s29  }
 0x155   :  { %196 = dma.done.wait [#allocation4], 256  }
 0x156   :  { %197 = vsyncadd [#allocation4], 4294967040 }
 0x157   :  { %136 = vsyncpa [#allocation3], 1 }
 0x158   :  { %137 = vsyncpa [#allocation4], 1 }

</bundles_post_ra>
